<compile_context>
chip_gen: v7x
topology: tpu7x:2x2x1
jax: 0.10.0
libtpu: 0.0.40
codegen_flags: <defaults>
</compile_context>

<pallas_src>
import jax
import jax.numpy as jnp
from jax.experimental import pallas as pl
from jax.experimental.pallas import tpu as pltpu


def _minfks_kernel(x_ref, k_ref, w_ref, o_ref):
    # x_ref: (d, TN) rows-on-lanes input tile
    # k_ref / w_ref: (3*d, Hs, 1) knots / hat coefficients, hats on sublanes
    # o_ref: (1, TN) global min over all d*Hs hats (lane-dense store)
    x = x_ref[...]
    d, tn = x.shape
    hs = k_ref.shape[1]
    m = None
    for i in range(d):                       # d is small & static -> unrolled
        # one sublane-broadcast of the dim's row, reused by all 3 taps
        xb = jnp.broadcast_to(x[i:i + 1, :], (hs, tn))          # (Hs, TN)
        r = 3 * i
        # j = 0 folded into the accumulator init; (Hs,1) columns lane-broadcast
        acc = w_ref[r] * jnp.maximum(xb - k_ref[r], 0.0)
        acc = acc + w_ref[r + 1] * jnp.maximum(xb - k_ref[r + 1], 0.0)
        acc = acc + w_ref[r + 2] * jnp.maximum(xb - k_ref[r + 2], 0.0)
        phi = jnp.maximum(acc, 0.0)                              # (Hs, TN)
        m = phi if m is None else jnp.minimum(m, phi)
    # Padded hats replicate hat 0 of each dim, so the sublane-min is unchanged.
    o_ref[...] = jnp.min(m, axis=0, keepdims=True)               # (1, TN)


def _fks_kernel(x_ref, k_ref, w_ref, o_ref):
    # d == 1 path: x_ref (TN, 1), k_ref/w_ref (3, H), o_ref (TN, H) narrow out.
    xc = x_ref[...]
    k = k_ref[...]
    w = w_ref[...]
    acc = w[0:1, :] * jnp.maximum(xc - k[0:1, :], 0.0)
    acc = acc + w[1:2, :] * jnp.maximum(xc - k[1:2, :], 0.0)
    acc = acc + w[2:3, :] * jnp.maximum(xc - k[2:3, :], 0.0)
    o_ref[...] = jnp.maximum(acc, 0.0)


def init_knots(key, d, num_hat, a=0.0, b=1.0):
    # Deterministic stand-in for torch.rand(num_hat,3).uniform_(a,b) per dim.
    return jax.random.uniform(key, (d, num_hat, 3), minval=a, maxval=b,
                              dtype=jnp.float32)


def _hat_coeffs(knots):
    # NOTE: duplicate knots after sorting give inf/NaN (inherited from the
    # PyTorch formula); assumed absent with continuous uniform init.
    k_sorted = jnp.sort(knots, axis=-1)                          # (d, H, 3)
    c1 = 1.0 / (k_sorted[..., 1] - k_sorted[..., 0])
    c2 = 1.0 / (k_sorted[..., 1] - k_sorted[..., 2]) - c1
    c3 = -(c1 + c2)
    W = jnp.stack([c1, c2, c3], axis=-1)                         # (d, H, 3)
    return k_sorted, W


@jax.jit
def minfks_forward(x, knots):
    """x: (N, d) float32 in [a,b]^d; knots: (d, num_hat, 3).
    Returns (N, 1) for d >= 2, (N, num_hat) for d == 1."""
    N, d = x.shape
    H = knots.shape[1]
    k_sorted, W = _hat_coeffs(knots)

    if d == 1:
        # --- FreeKnotHat path: (N, H) features, hats on lanes, narrow out ---
        k_l = k_sorted[0].T.astype(jnp.float32)                  # (3, H)
        w_l = W[0].T.astype(jnp.float32)                         # (3, H)

        SUB = 8
        n_sub = -(-N // SUB)
        spt = min(512, n_sub)                                    # tile cap 4096 rows
        if n_sub >= 256:                                         # >= 2048 rows: split
            spt = min(spt, max(128, -(-n_sub // 8)))             # ~8 steps, >=1024-row tiles
        tn = spt * SUB
        grid0 = -(-n_sub // spt)
        n_pad = grid0 * tn

        xp = x.astype(jnp.float32)
        if n_pad != N:
            xp = jnp.concatenate(
                [xp, jnp.zeros((n_pad - N, 1), jnp.float32)], axis=0)

        cost = pl.CostEstimate(
            flops=int(13 * n_pad * H), transcendentals=0,
            bytes_accessed=int(4 * (n_pad * (1 + H) + 2 * 3 * H)))

        out = pl.pallas_call(
            _fks_kernel,
            out_shape=jax.ShapeDtypeStruct((n_pad, H), jnp.float32),
            grid_spec=pltpu.PrefetchScalarGridSpec(
                num_scalar_prefetch=0,
                grid=(grid0,),
                in_specs=[
                    pl.BlockSpec((tn, 1), lambda i: (i, 0)),     # x rows
                    pl.BlockSpec((3, H), lambda i: (0, 0)),      # knots (resident)
                    pl.BlockSpec((3, H), lambda i: (0, 0)),      # coeffs (resident)
                ],
                out_specs=pl.BlockSpec((tn, H), lambda i: (i, 0)),
            ),
            compiler_params=pltpu.CompilerParams(
                dimension_semantics=("parallel",)),
            cost_estimate=cost,
        )(xp, k_l, w_l)
        return out[:N]

    # --- minfks path (d >= 2): rows on lanes, hats on sublanes --------------
    Hs = -(-H // 8) * 8                                          # hats -> sublane multiple
    k_l = jnp.transpose(k_sorted, (0, 2, 1))                     # (d, 3, H)
    w_l = jnp.transpose(W, (0, 2, 1))
    pad = Hs - H
    if pad:                                                      # replicate hat 0 (min-safe)
        k_l = jnp.concatenate([k_l, jnp.tile(k_l[..., :1], (1, 1, pad))], axis=-1)
        w_l = jnp.concatenate([w_l, jnp.tile(w_l[..., :1], (1, 1, pad))], axis=-1)
    k_l = k_l.reshape(3 * d, Hs, 1).astype(jnp.float32)          # (Hs,1) columns
    w_l = w_l.reshape(3 * d, Hs, 1).astype(jnp.float32)

    LANE = 128
    n_vr = -(-N // LANE)                                         # 128-row lane chunks
    vpt = min(64, n_vr)                                          # tile cap 8192 rows
    if n_vr >= 16:                                               # >= 2048 rows: split so
        vpt = min(vpt, max(8, -(-n_vr // 8)))                    # grid >= 2 (target ~8) steps
    tn = vpt * LANE
    grid0 = -(-n_vr // vpt)
    n_pad = grid0 * tn

    xT = x.astype(jnp.float32).T                                 # (d, N) rows-on-lanes
    if n_pad != N:
        xT = jnp.concatenate(
            [xT, jnp.zeros((d, n_pad - N), jnp.float32)], axis=1)

    cost = pl.CostEstimate(
        flops=int(15 * n_pad * d * Hs), transcendentals=0,
        bytes_accessed=int(4 * (n_pad * (d + 1) + 2 * 3 * d * Hs)))

    out = pl.pallas_call(
        _minfks_kernel,
        out_shape=jax.ShapeDtypeStruct((1, n_pad), jnp.float32),
        grid_spec=pltpu.PrefetchScalarGridSpec(
            num_scalar_prefetch=0,
            grid=(grid0,),
            in_specs=[
                pl.BlockSpec((d, tn), lambda i: (0, i)),         # x^T tile (rows on lanes)
                pl.BlockSpec((3 * d, Hs, 1), lambda i: (0, 0, 0)),   # knots (resident)
                pl.BlockSpec((3 * d, Hs, 1), lambda i: (0, 0, 0)),   # coeffs (resident)
            ],
            out_specs=pl.BlockSpec((1, tn), lambda i: (0, i)),   # lane-dense output
        ),
        compiler_params=pltpu.CompilerParams(
            dimension_semantics=("parallel",)),                  # row grid across v7x TCs
        cost_estimate=cost,
    )(xT, k_l, w_l)

    return out[0, :N].reshape(N, 1)


def minfks_reference(x, knots):
    # Pure-JAX reference of the PyTorch forward (for correctness check).
    k_sorted, W = _hat_coeffs(knots)
    z = jnp.maximum(x[:, :, None, None] - k_sorted[None], 0.)    # (N,d,H,3)
    phi = jnp.maximum(jnp.sum(W[None] * z, axis=-1), 0.)         # (N,d,H)
    if x.shape[1] == 1:
        return phi[:, 0, :]
    return jnp.min(phi.reshape(x.shape[0], -1), axis=1, keepdims=True)


if __name__ == "__main__":
    key = jax.random.PRNGKey(0)
    k_knots, k_x, k_knots1, k_x1 = jax.random.split(key, 4)

    # d >= 2 path (the minfks forward): (N, 1) output
    N, d, num_hat, a, b = 128, 4, 20, 0.0, 1.0
    knots = init_knots(k_knots, d, num_hat, a, b)                # (d, H, 3)
    x = jax.random.uniform(k_x, (N, d), minval=a, maxval=b, dtype=jnp.float32)
    y = jax.block_until_ready(minfks_forward(x, knots))          # (N, 1)
    y_ref = minfks_reference(x, knots)
    assert y.shape == (N, 1), y.shape
    assert jnp.allclose(y, y_ref, rtol=1e-5, atol=1e-5), \
        float(jnp.max(jnp.abs(y - y_ref)))

    # d == 1 path (single FreeKnotHat): (N, H) output
    knots1 = init_knots(k_knots1, 1, num_hat, a, b)              # (1, H, 3)
    x1 = jax.random.uniform(k_x1, (N, 1), minval=a, maxval=b, dtype=jnp.float32)
    y1 = jax.block_until_ready(minfks_forward(x1, knots1))       # (N, H)
    y1_ref = minfks_reference(x1, knots1)
    assert y1.shape == (N, num_hat), y1.shape
    assert jnp.allclose(y1, y1_ref, rtol=1e-5, atol=1e-5), \
        float(jnp.max(jnp.abs(y1 - y1_ref)))

    print("KERNEL_OK")
</pallas_src>

<mosaic_0001>
module attributes {stable_mosaic.version = 11 : i64} {
  func.func @_minfks_kernel(%arg0: i32, %arg1: memref<4x128xf32, #tpu.memory_space<vmem>>, %arg2: memref<12x24x1xf32, #tpu.memory_space<vmem>>, %arg3: memref<12x24x1xf32, #tpu.memory_space<vmem>>, %arg4: memref<1x128xf32, #tpu.memory_space<vmem>>) attributes {dimension_semantics = [#tpu.dimension_semantics<parallel>], iteration_bounds = array<i64: 1>, scalar_prefetch = 0 : i64, scratch_operands = 0 : i64, tpu.core_type = #tpu.core_type<tc>, window_params = [{transform_indices = @transform_0, window_bounds = array<i64: 4, 128>}, {pipeline_mode = #tpu.pipeline_mode<synchronous>, transform_indices = @transform_1, window_bounds = array<i64: 12, 24, 1>}, {pipeline_mode = #tpu.pipeline_mode<synchronous>, transform_indices = @transform_2, window_bounds = array<i64: 12, 24, 1>}, {transform_indices = @transform_3, window_bounds = array<i64: 1, 128>}]} {
    %c0 = arith.constant 0 : index
    %c0_0 = arith.constant 0 : index
    %0 = vector.load %arg1[%c0, %c0_0] : memref<4x128xf32, #tpu.memory_space<vmem>>, vector<4x128xf32>
    %1 = vector.extract_strided_slice %0 {offsets = [0, 0], sizes = [1, 128], strides = [1, 1]} : vector<4x128xf32> to vector<1x128xf32>
    %2 = vector.shape_cast %1 : vector<1x128xf32> to vector<1x128xf32>
    %3 = vector.broadcast %2 : vector<1x128xf32> to vector<24x128xf32>
    %c0_1 = arith.constant 0 : index
    %c0_2 = arith.constant 0 : index
    %c0_3 = arith.constant 0 : index
    %4 = vector.load %arg3[%c0_1, %c0_2, %c0_3] : memref<12x24x1xf32, #tpu.memory_space<vmem>>, vector<1x24x1xf32>
    %5 = vector.shape_cast %4 : vector<1x24x1xf32> to vector<24x1xf32>
    %c0_4 = arith.constant 0 : index
    %c0_5 = arith.constant 0 : index
    %c0_6 = arith.constant 0 : index
    %6 = vector.load %arg2[%c0_4, %c0_5, %c0_6] : memref<12x24x1xf32, #tpu.memory_space<vmem>>, vector<1x24x1xf32>
    %7 = vector.shape_cast %6 : vector<1x24x1xf32> to vector<24x1xf32>
    %8 = vector.broadcast %7 : vector<24x1xf32> to vector<24x128xf32>
    %9 = arith.subf %3, %8 : vector<24x128xf32>
    %cst = arith.constant 0.000000e+00 : f32
    %10 = vector.broadcast %cst : f32 to vector<24x128xf32>
    %11 = arith.maximumf %9, %10 : vector<24x128xf32>
    %12 = vector.broadcast %5 : vector<24x1xf32> to vector<24x128xf32>
    %13 = arith.mulf %12, %11 : vector<24x128xf32>
    %c1 = arith.constant 1 : index
    %c0_7 = arith.constant 0 : index
    %c0_8 = arith.constant 0 : index
    %14 = vector.load %arg3[%c1, %c0_7, %c0_8] : memref<12x24x1xf32, #tpu.memory_space<vmem>>, vector<1x24x1xf32>
    %15 = vector.shape_cast %14 : vector<1x24x1xf32> to vector<24x1xf32>
    %c1_9 = arith.constant 1 : index
    %c0_10 = arith.constant 0 : index
    %c0_11 = arith.constant 0 : index
    %16 = vector.load %arg2[%c1_9, %c0_10, %c0_11] : memref<12x24x1xf32, #tpu.memory_space<vmem>>, vector<1x24x1xf32>
    %17 = vector.shape_cast %16 : vector<1x24x1xf32> to vector<24x1xf32>
    %18 = vector.broadcast %17 : vector<24x1xf32> to vector<24x128xf32>
    %19 = arith.subf %3, %18 : vector<24x128xf32>
    %cst_12 = arith.constant 0.000000e+00 : f32
    %20 = vector.broadcast %cst_12 : f32 to vector<24x128xf32>
    %21 = arith.maximumf %19, %20 : vector<24x128xf32>
    %22 = vector.broadcast %15 : vector<24x1xf32> to vector<24x128xf32>
    %23 = arith.mulf %22, %21 : vector<24x128xf32>
    %24 = arith.addf %13, %23 : vector<24x128xf32>
    %c2 = arith.constant 2 : index
    %c0_13 = arith.constant 0 : index
    %c0_14 = arith.constant 0 : index
    %25 = vector.load %arg3[%c2, %c0_13, %c0_14] : memref<12x24x1xf32, #tpu.memory_space<vmem>>, vector<1x24x1xf32>
    %26 = vector.shape_cast %25 : vector<1x24x1xf32> to vector<24x1xf32>
    %c2_15 = arith.constant 2 : index
    %c0_16 = arith.constant 0 : index
    %c0_17 = arith.constant 0 : index
    %27 = vector.load %arg2[%c2_15, %c0_16, %c0_17] : memref<12x24x1xf32, #tpu.memory_space<vmem>>, vector<1x24x1xf32>
    %28 = vector.shape_cast %27 : vector<1x24x1xf32> to vector<24x1xf32>
    %29 = vector.broadcast %28 : vector<24x1xf32> to vector<24x128xf32>
    %30 = arith.subf %3, %29 : vector<24x128xf32>
    %cst_18 = arith.constant 0.000000e+00 : f32
    %31 = vector.broadcast %cst_18 : f32 to vector<24x128xf32>
    %32 = arith.maximumf %30, %31 : vector<24x128xf32>
    %33 = vector.broadcast %26 : vector<24x1xf32> to vector<24x128xf32>
    %34 = arith.mulf %33, %32 : vector<24x128xf32>
    %35 = arith.addf %24, %34 : vector<24x128xf32>
    %cst_19 = arith.constant 0.000000e+00 : f32
    %36 = vector.broadcast %cst_19 : f32 to vector<24x128xf32>
    %37 = arith.maximumf %35, %36 : vector<24x128xf32>
    %38 = vector.extract_strided_slice %0 {offsets = [1, 0], sizes = [1, 128], strides = [1, 1]} : vector<4x128xf32> to vector<1x128xf32>
    %39 = vector.shape_cast %38 : vector<1x128xf32> to vector<1x128xf32>
    %40 = vector.broadcast %39 : vector<1x128xf32> to vector<24x128xf32>
    %c3 = arith.constant 3 : index
    %c0_20 = arith.constant 0 : index
    %c0_21 = arith.constant 0 : index
    %41 = vector.load %arg3[%c3, %c0_20, %c0_21] : memref<12x24x1xf32, #tpu.memory_space<vmem>>, vector<1x24x1xf32>
    %42 = vector.shape_cast %41 : vector<1x24x1xf32> to vector<24x1xf32>
    %c3_22 = arith.constant 3 : index
    %c0_23 = arith.constant 0 : index
    %c0_24 = arith.constant 0 : index
    %43 = vector.load %arg2[%c3_22, %c0_23, %c0_24] : memref<12x24x1xf32, #tpu.memory_space<vmem>>, vector<1x24x1xf32>
    %44 = vector.shape_cast %43 : vector<1x24x1xf32> to vector<24x1xf32>
    %45 = vector.broadcast %44 : vector<24x1xf32> to vector<24x128xf32>
    %46 = arith.subf %40, %45 : vector<24x128xf32>
    %cst_25 = arith.constant 0.000000e+00 : f32
    %47 = vector.broadcast %cst_25 : f32 to vector<24x128xf32>
    %48 = arith.maximumf %46, %47 : vector<24x128xf32>
    %49 = vector.broadcast %42 : vector<24x1xf32> to vector<24x128xf32>
    %50 = arith.mulf %49, %48 : vector<24x128xf32>
    %c4 = arith.constant 4 : index
    %c0_26 = arith.constant 0 : index
    %c0_27 = arith.constant 0 : index
    %51 = vector.load %arg3[%c4, %c0_26, %c0_27] : memref<12x24x1xf32, #tpu.memory_space<vmem>>, vector<1x24x1xf32>
    %52 = vector.shape_cast %51 : vector<1x24x1xf32> to vector<24x1xf32>
    %c4_28 = arith.constant 4 : index
    %c0_29 = arith.constant 0 : index
    %c0_30 = arith.constant 0 : index
    %53 = vector.load %arg2[%c4_28, %c0_29, %c0_30] : memref<12x24x1xf32, #tpu.memory_space<vmem>>, vector<1x24x1xf32>
    %54 = vector.shape_cast %53 : vector<1x24x1xf32> to vector<24x1xf32>
    %55 = vector.broadcast %54 : vector<24x1xf32> to vector<24x128xf32>
    %56 = arith.subf %40, %55 : vector<24x128xf32>
    %cst_31 = arith.constant 0.000000e+00 : f32
    %57 = vector.broadcast %cst_31 : f32 to vector<24x128xf32>
    %58 = arith.maximumf %56, %57 : vector<24x128xf32>
    %59 = vector.broadcast %52 : vector<24x1xf32> to vector<24x128xf32>
    %60 = arith.mulf %59, %58 : vector<24x128xf32>
    %61 = arith.addf %50, %60 : vector<24x128xf32>
    %c5 = arith.constant 5 : index
    %c0_32 = arith.constant 0 : index
    %c0_33 = arith.constant 0 : index
    %62 = vector.load %arg3[%c5, %c0_32, %c0_33] : memref<12x24x1xf32, #tpu.memory_space<vmem>>, vector<1x24x1xf32>
    %63 = vector.shape_cast %62 : vector<1x24x1xf32> to vector<24x1xf32>
    %c5_34 = arith.constant 5 : index
    %c0_35 = arith.constant 0 : index
    %c0_36 = arith.constant 0 : index
    %64 = vector.load %arg2[%c5_34, %c0_35, %c0_36] : memref<12x24x1xf32, #tpu.memory_space<vmem>>, vector<1x24x1xf32>
    %65 = vector.shape_cast %64 : vector<1x24x1xf32> to vector<24x1xf32>
    %66 = vector.broadcast %65 : vector<24x1xf32> to vector<24x128xf32>
    %67 = arith.subf %40, %66 : vector<24x128xf32>
    %cst_37 = arith.constant 0.000000e+00 : f32
    %68 = vector.broadcast %cst_37 : f32 to vector<24x128xf32>
    %69 = arith.maximumf %67, %68 : vector<24x128xf32>
    %70 = vector.broadcast %63 : vector<24x1xf32> to vector<24x128xf32>
    %71 = arith.mulf %70, %69 : vector<24x128xf32>
    %72 = arith.addf %61, %71 : vector<24x128xf32>
    %cst_38 = arith.constant 0.000000e+00 : f32
    %73 = vector.broadcast %cst_38 : f32 to vector<24x128xf32>
    %74 = arith.maximumf %72, %73 : vector<24x128xf32>
    %75 = arith.minimumf %37, %74 : vector<24x128xf32>
    %76 = vector.extract_strided_slice %0 {offsets = [2, 0], sizes = [1, 128], strides = [1, 1]} : vector<4x128xf32> to vector<1x128xf32>
    %77 = vector.shape_cast %76 : vector<1x128xf32> to vector<1x128xf32>
    %78 = vector.broadcast %77 : vector<1x128xf32> to vector<24x128xf32>
    %c6 = arith.constant 6 : index
    %c0_39 = arith.constant 0 : index
    %c0_40 = arith.constant 0 : index
    %79 = vector.load %arg3[%c6, %c0_39, %c0_40] : memref<12x24x1xf32, #tpu.memory_space<vmem>>, vector<1x24x1xf32>
    %80 = vector.shape_cast %79 : vector<1x24x1xf32> to vector<24x1xf32>
    %c6_41 = arith.constant 6 : index
    %c0_42 = arith.constant 0 : index
    %c0_43 = arith.constant 0 : index
    %81 = vector.load %arg2[%c6_41, %c0_42, %c0_43] : memref<12x24x1xf32, #tpu.memory_space<vmem>>, vector<1x24x1xf32>
    %82 = vector.shape_cast %81 : vector<1x24x1xf32> to vector<24x1xf32>
    %83 = vector.broadcast %82 : vector<24x1xf32> to vector<24x128xf32>
    %84 = arith.subf %78, %83 : vector<24x128xf32>
    %cst_44 = arith.constant 0.000000e+00 : f32
    %85 = vector.broadcast %cst_44 : f32 to vector<24x128xf32>
    %86 = arith.maximumf %84, %85 : vector<24x128xf32>
    %87 = vector.broadcast %80 : vector<24x1xf32> to vector<24x128xf32>
    %88 = arith.mulf %87, %86 : vector<24x128xf32>
    %c7 = arith.constant 7 : index
    %c0_45 = arith.constant 0 : index
    %c0_46 = arith.constant 0 : index
    %89 = vector.load %arg3[%c7, %c0_45, %c0_46] : memref<12x24x1xf32, #tpu.memory_space<vmem>>, vector<1x24x1xf32>
    %90 = vector.shape_cast %89 : vector<1x24x1xf32> to vector<24x1xf32>
    %c7_47 = arith.constant 7 : index
    %c0_48 = arith.constant 0 : index
    %c0_49 = arith.constant 0 : index
    %91 = vector.load %arg2[%c7_47, %c0_48, %c0_49] : memref<12x24x1xf32, #tpu.memory_space<vmem>>, vector<1x24x1xf32>
    %92 = vector.shape_cast %91 : vector<1x24x1xf32> to vector<24x1xf32>
    %93 = vector.broadcast %92 : vector<24x1xf32> to vector<24x128xf32>
    %94 = arith.subf %78, %93 : vector<24x128xf32>
    %cst_50 = arith.constant 0.000000e+00 : f32
    %95 = vector.broadcast %cst_50 : f32 to vector<24x128xf32>
    %96 = arith.maximumf %94, %95 : vector<24x128xf32>
    %97 = vector.broadcast %90 : vector<24x1xf32> to vector<24x128xf32>
    %98 = arith.mulf %97, %96 : vector<24x128xf32>
    %99 = arith.addf %88, %98 : vector<24x128xf32>
    %c8 = arith.constant 8 : index
    %c0_51 = arith.constant 0 : index
    %c0_52 = arith.constant 0 : index
    %100 = vector.load %arg3[%c8, %c0_51, %c0_52] : memref<12x24x1xf32, #tpu.memory_space<vmem>>, vector<1x24x1xf32>
    %101 = vector.shape_cast %100 : vector<1x24x1xf32> to vector<24x1xf32>
    %c8_53 = arith.constant 8 : index
    %c0_54 = arith.constant 0 : index
    %c0_55 = arith.constant 0 : index
    %102 = vector.load %arg2[%c8_53, %c0_54, %c0_55] : memref<12x24x1xf32, #tpu.memory_space<vmem>>, vector<1x24x1xf32>
    %103 = vector.shape_cast %102 : vector<1x24x1xf32> to vector<24x1xf32>
    %104 = vector.broadcast %103 : vector<24x1xf32> to vector<24x128xf32>
    %105 = arith.subf %78, %104 : vector<24x128xf32>
    %cst_56 = arith.constant 0.000000e+00 : f32
    %106 = vector.broadcast %cst_56 : f32 to vector<24x128xf32>
    %107 = arith.maximumf %105, %106 : vector<24x128xf32>
    %108 = vector.broadcast %101 : vector<24x1xf32> to vector<24x128xf32>
    %109 = arith.mulf %108, %107 : vector<24x128xf32>
    %110 = arith.addf %99, %109 : vector<24x128xf32>
    %cst_57 = arith.constant 0.000000e+00 : f32
    %111 = vector.broadcast %cst_57 : f32 to vector<24x128xf32>
    %112 = arith.maximumf %110, %111 : vector<24x128xf32>
    %113 = arith.minimumf %75, %112 : vector<24x128xf32>
    %114 = vector.extract_strided_slice %0 {offsets = [3, 0], sizes = [1, 128], strides = [1, 1]} : vector<4x128xf32> to vector<1x128xf32>
    %115 = vector.shape_cast %114 : vector<1x128xf32> to vector<1x128xf32>
    %116 = vector.broadcast %115 : vector<1x128xf32> to vector<24x128xf32>
    %c9 = arith.constant 9 : index
    %c0_58 = arith.constant 0 : index
    %c0_59 = arith.constant 0 : index
    %117 = vector.load %arg3[%c9, %c0_58, %c0_59] : memref<12x24x1xf32, #tpu.memory_space<vmem>>, vector<1x24x1xf32>
    %118 = vector.shape_cast %117 : vector<1x24x1xf32> to vector<24x1xf32>
    %c9_60 = arith.constant 9 : index
    %c0_61 = arith.constant 0 : index
    %c0_62 = arith.constant 0 : index
    %119 = vector.load %arg2[%c9_60, %c0_61, %c0_62] : memref<12x24x1xf32, #tpu.memory_space<vmem>>, vector<1x24x1xf32>
    %120 = vector.shape_cast %119 : vector<1x24x1xf32> to vector<24x1xf32>
    %121 = vector.broadcast %120 : vector<24x1xf32> to vector<24x128xf32>
    %122 = arith.subf %116, %121 : vector<24x128xf32>
    %cst_63 = arith.constant 0.000000e+00 : f32
    %123 = vector.broadcast %cst_63 : f32 to vector<24x128xf32>
    %124 = arith.maximumf %122, %123 : vector<24x128xf32>
    %125 = vector.broadcast %118 : vector<24x1xf32> to vector<24x128xf32>
    %126 = arith.mulf %125, %124 : vector<24x128xf32>
    %c10 = arith.constant 10 : index
    %c0_64 = arith.constant 0 : index
    %c0_65 = arith.constant 0 : index
    %127 = vector.load %arg3[%c10, %c0_64, %c0_65] : memref<12x24x1xf32, #tpu.memory_space<vmem>>, vector<1x24x1xf32>
    %128 = vector.shape_cast %127 : vector<1x24x1xf32> to vector<24x1xf32>
    %c10_66 = arith.constant 10 : index
    %c0_67 = arith.constant 0 : index
    %c0_68 = arith.constant 0 : index
    %129 = vector.load %arg2[%c10_66, %c0_67, %c0_68] : memref<12x24x1xf32, #tpu.memory_space<vmem>>, vector<1x24x1xf32>
    %130 = vector.shape_cast %129 : vector<1x24x1xf32> to vector<24x1xf32>
    %131 = vector.broadcast %130 : vector<24x1xf32> to vector<24x128xf32>
    %132 = arith.subf %116, %131 : vector<24x128xf32>
    %cst_69 = arith.constant 0.000000e+00 : f32
    %133 = vector.broadcast %cst_69 : f32 to vector<24x128xf32>
    %134 = arith.maximumf %132, %133 : vector<24x128xf32>
    %135 = vector.broadcast %128 : vector<24x1xf32> to vector<24x128xf32>
    %136 = arith.mulf %135, %134 : vector<24x128xf32>
    %137 = arith.addf %126, %136 : vector<24x128xf32>
    %c11 = arith.constant 11 : index
    %c0_70 = arith.constant 0 : index
    %c0_71 = arith.constant 0 : index
    %138 = vector.load %arg3[%c11, %c0_70, %c0_71] : memref<12x24x1xf32, #tpu.memory_space<vmem>>, vector<1x24x1xf32>
    %139 = vector.shape_cast %138 : vector<1x24x1xf32> to vector<24x1xf32>
    %c11_72 = arith.constant 11 : index
    %c0_73 = arith.constant 0 : index
    %c0_74 = arith.constant 0 : index
    %140 = vector.load %arg2[%c11_72, %c0_73, %c0_74] : memref<12x24x1xf32, #tpu.memory_space<vmem>>, vector<1x24x1xf32>
    %141 = vector.shape_cast %140 : vector<1x24x1xf32> to vector<24x1xf32>
    %142 = vector.broadcast %141 : vector<24x1xf32> to vector<24x128xf32>
    %143 = arith.subf %116, %142 : vector<24x128xf32>
    %cst_75 = arith.constant 0.000000e+00 : f32
    %144 = vector.broadcast %cst_75 : f32 to vector<24x128xf32>
    %145 = arith.maximumf %143, %144 : vector<24x128xf32>
    %146 = vector.broadcast %139 : vector<24x1xf32> to vector<24x128xf32>
    %147 = arith.mulf %146, %145 : vector<24x128xf32>
    %148 = arith.addf %137, %147 : vector<24x128xf32>
    %cst_76 = arith.constant 0.000000e+00 : f32
    %149 = vector.broadcast %cst_76 : f32 to vector<24x128xf32>
    %150 = arith.maximumf %148, %149 : vector<24x128xf32>
    %151 = arith.minimumf %113, %150 : vector<24x128xf32>
    %cst_77 = arith.constant dense<0x7F800000> : vector<128xf32>
    %152 = vector.multi_reduction <minimumf>, %151, %cst_77 [0] : vector<24x128xf32> to vector<128xf32>
    %153 = vector.shape_cast %152 : vector<128xf32> to vector<1x128xf32>
    %c0_78 = arith.constant 0 : index
    %c0_79 = arith.constant 0 : index
    %154 = vector.load %arg4[%c0_78, %c0_79] : memref<1x128xf32, #tpu.memory_space<vmem>>, vector<1x128xf32>
    tpu.vector_store %arg4[%c0_78, %c0_79], %153 {strides = array<i32>} : memref<1x128xf32, #tpu.memory_space<vmem>>, vector<1x128xf32>,
    return
  }
  func.func @transform_0(%arg0: i32) -> (i32, i32) {
    %c0_i32 = arith.constant 0 : i32
    %c0_i32_0 = arith.constant 0 : i32
    return %c0_i32, %arg0 : i32, i32
  }
  func.func @transform_1(%arg0: i32) -> (i32, i32, i32) {
    %c0_i32 = arith.constant 0 : i32
    %c0_i32_0 = arith.constant 0 : i32
    %c0_i32_1 = arith.constant 0 : i32
    %c0_i32_2 = arith.constant 0 : i32
    return %c0_i32, %c0_i32_0, %c0_i32_1 : i32, i32, i32
  }
  func.func @transform_2(%arg0: i32) -> (i32, i32, i32) {
    %c0_i32 = arith.constant 0 : i32
    %c0_i32_0 = arith.constant 0 : i32
    %c0_i32_1 = arith.constant 0 : i32
    %c0_i32_2 = arith.constant 0 : i32
    return %c0_i32, %c0_i32_0, %c0_i32_1 : i32, i32, i32
  }
  func.func @transform_3(%arg0: i32) -> (i32, i32) {
    %c0_i32 = arith.constant 0 : i32
    %c0_i32_0 = arith.constant 0 : i32
    return %c0_i32, %arg0 : i32, i32
  }
}

</mosaic_0001>

<bundles_post_ra>
// kernel: minfks_forward.1
= control target key start
LH: loop header
LB: loop body
LE: loop exit
PB: predicated region body
PF: predicated region fallthrough
CT: control target
= control target key end

     0   :  { %v756_v2 = vmov 0   ;;  %s1045_s0 = inlined_call_operand.vmem [shape: f32[4,128], index: 0, kind: input, shape index: {}]   ;;  %s1046_s1 = inlined_call_operand.vmem [shape: f32[12,24,1], index: 1, kind: input, shape index: {}]   ;;  %s1047_s2 = inlined_call_operand.vmem [shape: f32[12,24,1], index: 2, kind: input, shape index: {}]   ;;  %s1048_s3 = inlined_call_operand.hbm [shape: f32[1,128], index: 3, kind: output, shape index: {}]  }
   0x1   :  { %v25_v0 = vld [vmem:[%s1046_s1 + $0x10] sm:$0xff]  ;;  %v23_v1 = vld [vmem:[%s1046_s1] sm:$0xff]  ;;  %731 = vset.pattern.permute.xlu1 %v756_v2  ;;  %730 = vset.pattern.permute.xlu0 %v756_v2  ;;  %v24_v3 = vld [vmem:[%s1046_s1 + $0x8] sm:$0xff] }
   0x2   :  { %38 = vperm.xlu1 %731, %v25_v0   ;;  %28 = vperm.xlu0 %730, %v23_v1   ;;  %v20_v4 = vld [vmem:[%s1047_s2] sm:$0xff]  ;;  %v21_v5 = vld [vmem:[%s1047_s2 + $0x8] sm:$0xff]  ;;  %v22_v6 = vld [vmem:[%s1047_s2 + $0x10] sm:$0xff] }
   0x3   :  { %v665_v7 = vld [vmem:[%s1046_s1 + $0x18] sm:$0xff]  ;;  %v666_v8 = vld [vmem:[%s1046_s1 + $0x20] sm:$0xff]  ;;  %v667_v9 = vld [vmem:[%s1046_s1 + $0x28] sm:$0xff] }
   0x4   :  { %v662_v10 = vld [vmem:[%s1047_s2 + $0x18] sm:$0xff]  ;;  %v663_v11 = vld [vmem:[%s1047_s2 + $0x20] sm:$0xff]  ;;  %v664_v12 = vld [vmem:[%s1047_s2 + $0x28] sm:$0xff] }
   0x5   :  { %v671_v13 = vld [vmem:[%s1046_s1 + $0x30] sm:$0xff]  ;;  %v672_v14 = vld [vmem:[%s1046_s1 + $0x38] sm:$0xff] }
   0x6   :  { %33 = vperm.xlu0 %730, %v24_v3   ;;  %49 = vperm.xlu1 %731, %v20_v4  }
   0xa   :  { %54 = vperm.xlu0 %730, %v21_v5   ;;  %59 = vperm.xlu1 %731, %v22_v6  }
   0xe   :  { %75 = vperm.xlu0 %730, %v665_v7   ;;  %80 = vperm.xlu1 %731, %v666_v8  }
  0x12   :  { %85 = vperm.xlu0 %730, %v667_v9   ;;  %96 = vperm.xlu1 %731, %v662_v10  }
  0x16   :  { %101 = vperm.xlu0 %730, %v663_v11   ;;  %106 = vperm.xlu1 %731, %v664_v12  }
  0x17   :  { %8 = vsyncpa [#allocation3], 0  ;;  %v673_v15 = vld [vmem:[%s1046_s1 + $0x40] sm:$0xff]  ;;  %v668_v16 = vld [vmem:[%s1047_s2 + $0x30] sm:$0xff]  ;;  %v16_v59 = vlaneseq }
  0x18   :  { %v669_v17 = vld [vmem:[%s1047_s2 + $0x38] sm:$0xff]  ;;  %v670_v18 = vld [vmem:[%s1047_s2 + $0x40] sm:$0xff]  ;;  %v677_v19 = vld [vmem:[%s1046_s1 + $0x48] sm:$0xff] }
  0x19   :  { %v678_v20 = vld [vmem:[%s1046_s1 + $0x50] sm:$0xff]  ;;  %v679_v21 = vld [vmem:[%s1046_s1 + $0x58] sm:$0xff]  ;;  %v674_v22 = vld [vmem:[%s1047_s2 + $0x48] sm:$0xff]  ;;  %v958_v62 = vshrl.u32 %v16_v59, 7 }
  0x1a   :  { %125 = vperm.xlu0 %730, %v671_v13   ;;  %130 = vperm.xlu1 %731, %v672_v14   ;;  %v675_v23 = vld [vmem:[%s1047_s2 + $0x50] sm:$0xff]  ;;  %v676_v24 = vld [vmem:[%s1047_s2 + $0x58] sm:$0xff]  ;;  %v683_v25 = vld [vmem:[%s1046_s1 + $0x60] sm:$0xff] }
  0x1b   :  { %v684_v26 = vld [vmem:[%s1046_s1 + $0x68] sm:$0xff]  ;;  %v685_v27 = vld [vmem:[%s1046_s1 + $0x70] sm:$0xff]  ;;  %v680_v28 = vld [vmem:[%s1047_s2 + $0x60] sm:$0xff]  ;;  %v18_v1 = vsub.s32 0, %v958_v62 }
  0x1c   :  { %v681_v29 = vld [vmem:[%s1047_s2 + $0x68] sm:$0xff]  ;;  %v682_v30 = vld [vmem:[%s1047_s2 + $0x70] sm:$0xff]  ;;  %v689_v31 = vld [vmem:[%s1046_s1 + $0x78] sm:$0xff] }
  0x1d   :  { %v690_v32 = vld [vmem:[%s1046_s1 + $0x80] sm:$0xff]  ;;  %v691_v33 = vld [vmem:[%s1046_s1 + $0x88] sm:$0xff]  ;;  %v686_v34 = vld [vmem:[%s1047_s2 + $0x78] sm:$0xff] }
  0x1e   :  { %135 = vperm.xlu0 %730, %v673_v15   ;;  %146 = vperm.xlu1 %731, %v668_v16   ;;  %v687_v35 = vld [vmem:[%s1047_s2 + $0x80] sm:$0xff]  ;;  %v688_v36 = vld [vmem:[%s1047_s2 + $0x88] sm:$0xff]  ;;  %v695_v37 = vld [vmem:[%s1046_s1 + $0x90] sm:$0xff] }
  0x1f   :  { %v696_v38 = vld [vmem:[%s1046_s1 + $0x98] sm:$0xff]  ;;  %v697_v39 = vld [vmem:[%s1046_s1 + $0xa0] sm:$0xff]  ;;  %v692_v40 = vld [vmem:[%s1047_s2 + $0x90] sm:$0xff] }
  0x20   :  { %v693_v41 = vld [vmem:[%s1047_s2 + $0x98] sm:$0xff]  ;;  %v694_v42 = vld [vmem:[%s1047_s2 + $0xa0] sm:$0xff]  ;;  %v701_v43 = vld [vmem:[%s1046_s1 + $0xa8] sm:$0xff] }
  0x21   :  { %v702_v44 = vld [vmem:[%s1046_s1 + $0xb0] sm:$0xff]  ;;  %v703_v45 = vld [vmem:[%s1046_s1 + $0xb8] sm:$0xff]  ;;  %v698_v46 = vld [vmem:[%s1047_s2 + $0xa8] sm:$0xff] }
  0x22   :  { %151 = vperm.xlu0 %730, %v669_v17   ;;  %156 = vperm.xlu1 %731, %v670_v18   ;;  %v699_v47 = vld [vmem:[%s1047_s2 + $0xb0] sm:$0xff]  ;;  %v700_v48 = vld [vmem:[%s1047_s2 + $0xb8] sm:$0xff]  ;;  %v707_v49 = vld [vmem:[%s1046_s1 + $0xc0] sm:$0xff] }
  0x23   :  { %v708_v50 = vld [vmem:[%s1046_s1 + $0xc8] sm:$0xff]  ;;  %v713_v51 = vld [vmem:[%s1046_s1 + $0xd8] sm:$0xff]  ;;  %v714_v52 = vld [vmem:[%s1046_s1 + $0xe0] sm:$0xff] }
  0x24   :  { %v719_v53 = vld [vmem:[%s1046_s1 + $0xf0] sm:$0xff]  ;;  %v720_v54 = vld [vmem:[%s1046_s1 + $0xf8] sm:$0xff]  ;;  %v715_v56 = vld [vmem:[%s1046_s1 + $0xe8] sm:$0xff] }
  0x25   :  { %v709_v55 = vld [vmem:[%s1046_s1 + $0xd0] sm:$0xff]  ;;  %v721_v57 = vld [vmem:[%s1046_s1 + $0x100] sm:$0xff]  ;;  %v725_v58 = vld [vmem:[%s1046_s1 + $0x108] sm:$0xff] }
  0x26   :  { %182 = vperm.xlu0 %730, %v677_v19   ;;  %187 = vperm.xlu1 %731, %v678_v20   ;;  %v726_v60 = vld [vmem:[%s1046_s1 + $0x110] sm:$0xff]  ;;  %v704_v61 = vld [vmem:[%s1047_s2 + $0xc0] sm:$0xff]  ;;  %v705_v63 = vld [vmem:[%s1047_s2 + $0xc8] sm:$0xff] }
  0x27   :  { %v710_v0 = vld [vmem:[%s1047_s2 + $0xd8] sm:$0xff]  ;;  %v711_v2 = vld [vmem:[%s1047_s2 + $0xe0] sm:$0xff]  ;;  %v716_v3 = vld [vmem:[%s1047_s2 + $0xf0] sm:$0xff] }
  0x28   :  { %v976_v4 = vld [vmem:[%s1045_s0] sm:$0xf]  ;;  %v717_v6 = vld [vmem:[%s1047_s2 + $0xf8] sm:$0xff]  ;;  %v706_v11 = vld [vmem:[%s1047_s2 + $0xd0] sm:$0xff] }
  0x29   :  { %v19_v5 = vrot.slane %v976_v4, %v18_v1  ;;  %v727_v7 = vld [vmem:[%s1046_s1 + $0x118] sm:$0xff]  ;;  %v712_v12 = vld [vmem:[%s1047_s2 + $0xe8] sm:$0xff]  ;;  %v718_v19 = vld [vmem:[%s1047_s2 + $0x100] sm:$0xff] }
  0x2a   :  { %192 = vperm.xlu0 %730, %v679_v21   ;;  %203 = vperm.xlu1 %731, %v674_v22   ;;  %v722_v20 = vld [vmem:[%s1047_s2 + $0x108] sm:$0xff] }
  0x2e   :  { %208 = vperm.xlu0 %730, %v675_v23   ;;  %213 = vperm.xlu1 %731, %v676_v24  }
  0x32   :  { %229 = vperm.xlu0 %730, %v683_v25   ;;  %234 = vperm.xlu1 %731, %v684_v26  }
  0x36   :  { %239 = vperm.xlu0 %730, %v685_v27   ;;  %250 = vperm.xlu1 %731, %v680_v28   ;;  %v723_v27 = vld [vmem:[%s1047_s2 + $0x110] sm:$0xff]  ;;  %v724_v28 = vld [vmem:[%s1047_s2 + $0x118] sm:$0xff]  ;;  %s757_s2 = smov [#allocation2]  }
  0x37   :  { %s654_s21 = sshll.u32 %s757_s2, 4  ;;  %s655_s21 = int_to_ptr.vmem [resolvable:$true] %s654_s21 }
  0x38   :  { %s732_s22 = scalar_lea.vmem %s655_s21, 16  ;;  %s736_s23 = scalar_lea.vmem %s655_s21, 32 }
  0x39   :  { %p733_p0 = scmp.ne.s32.totalorder %s655_s21, %s732_s22  ;;  %p737_p1 = scmp.lt.s32.totalorder %s655_s21, %s655_s21 }
  0x3a   :  { %255 = vperm.xlu0 %730, %v681_v29   ;;  %260 = vperm.xlu1 %731, %v682_v30   ;;  %p738_p2 = scmp.lt.s32.totalorder %s736_s23, %s732_s22 }
  0x3c   :  { %p739_p3 = por %p738_p2, %p737_p1 }
  0x3e   :  { %279 = vperm.xlu0 %730, %v689_v31   ;;  %284 = vperm.xlu1 %731, %v690_v32   ;;  %p740_p4 = pnand %p739_p3, %p733_p0 }
  0x42   :  { %289 = vperm.xlu0 %730, %v691_v33   ;;  %300 = vperm.xlu1 %731, %v686_v34  }
  0x46   :  { %305 = vperm.xlu0 %730, %v687_v35   ;;  %310 = vperm.xlu1 %731, %v688_v36  }
  0x4a   :  { %339 = vperm.xlu0 %730, %v695_v37   ;;  %344 = vperm.xlu1 %731, %v696_v38  }
  0x4e   :  { %349 = vperm.xlu0 %730, %v697_v39   ;;  %360 = vperm.xlu1 %731, %v692_v40  }
  0x52   :  { %365 = vperm.xlu0 %730, %v693_v41   ;;  %370 = vperm.xlu1 %731, %v694_v42  }
  0x56   :  { %386 = vperm.xlu0 %730, %v701_v43   ;;  %391 = vperm.xlu1 %731, %v702_v44  }
  0x5a   :  { %396 = vperm.xlu0 %730, %v703_v45   ;;  %407 = vperm.xlu1 %731, %v698_v46  }
  0x5e   :  { %412 = vperm.xlu0 %730, %v699_v47   ;;  %417 = vperm.xlu1 %731, %v700_v48  }
  0x62   :  { %436 = vperm.xlu0 %730, %v707_v49   ;;  %441 = vperm.xlu1 %731, %v708_v50  }
  0x66   :  { %496 = vperm.xlu0 %730, %v713_v51   ;;  %501 = vperm.xlu1 %731, %v714_v52  }
  0x6a   :  { %543 = vperm.xlu0 %730, %v719_v53   ;;  %548 = vperm.xlu1 %731, %v720_v54  }
  0x6e   :  { %446 = vperm.xlu0 %730, %v709_v55   ;;  %506 = vperm.xlu1 %731, %v715_v56   ;;  %v170_v56 = vsub.s32 1, %v958_v62 }
  0x70   :  { %v171_v1 = vrot.slane %v976_v4, %v170_v56 }
  0x72   :  { %553 = vperm.xlu0 %730, %v721_v57   ;;  %593 = vperm.xlu1 %731, %v725_v58  }
  0x76   :  { %598 = vperm.xlu0 %730, %v726_v60   ;;  %457 = vperm.xlu1 %731, %v704_v61  }
  0x7a   :  { %462 = vperm.xlu0 %730, %v705_v63   ;;  %517 = vperm.xlu1 %731, %v710_v0  }
  0x7e   :  { %522 = vperm.xlu0 %730, %v711_v2   ;;  %564 = vperm.xlu1 %731, %v716_v3  }
  0x81   :  { %v39_v8 = vpop.permute.xlu1 %38  ;;  %v29_v9 = vpop.permute.xlu0 %28 }
  0x82   :  { %v41_v10 = vsub.f32 %v19_v5, %v29_v9  ;;  %569 = vperm.xlu0 %730, %v717_v6   ;;  %603 = vperm.xlu1 %731, %v727_v7   ;;  %v43_v13 = vsub.f32 %v19_v5, %v39_v8 }
  0x84   :  { %v44_v14 = vmax.f32 %v41_v10, 0.0  ;;  %v46_v21 = vmax.f32 %v43_v13, 0.0 }
  0x85   :  { %v34_v15 = vpop.permute.xlu0 %33  ;;  %v50_v16 = vpop.permute.xlu1 %49 }
  0x86   :  { %v42_v17 = vsub.f32 %v19_v5, %v34_v15  ;;  %v62_v18 = vmul.f32 %v50_v16, %v44_v14  ;;  %467 = vperm.xlu0 %730, %v706_v11   ;;  %527 = vperm.xlu1 %731, %v712_v12  }
  0x88   :  { %v45_v22 = vmax.f32 %v42_v17, 0.0 }
  0x89   :  { %v55_v23 = vpop.permute.xlu0 %54  ;;  %v60_v24 = vpop.permute.xlu1 %59 }
  0x8a   :  { %v63_v25 = vmul.f32 %v55_v23, %v45_v22  ;;  %v64_v26 = vmul.f32 %v60_v24, %v46_v21  ;;  %574 = vperm.xlu0 %730, %v718_v19   ;;  %614 = vperm.xlu1 %731, %v722_v20  }
  0x8d   :  { %v76_v29 = vpop.permute.xlu0 %75  ;;  %v81_v30 = vpop.permute.xlu1 %80 }
  0x8e   :  { %v88_v31 = vsub.f32 %v19_v5, %v76_v29  ;;  %619 = vperm.xlu0 %730, %v723_v27   ;;  %624 = vperm.xlu1 %731, %v724_v28   ;;  %v89_v33 = vsub.f32 %v19_v5, %v81_v30 }
  0x90   :  { %v91_v32 = vmax.f32 %v88_v31, 0.0  ;;  %v92_v38 = vmax.f32 %v89_v33, 0.0 }
  0x91   :  { %v86_v34 = vpop.permute.xlu0 %85  ;;  %v97_v35 = vpop.permute.xlu1 %96 }
  0x92   :  { %v90_v36 = vsub.f32 %v19_v5, %v86_v34  ;;  %v109_v37 = vmul.f32 %v97_v35, %v91_v32 }
  0x94   :  { %v93_v39 = vmax.f32 %v90_v36, 0.0  ;;  %v112_v40 = vadd.f32 %v109_v37, %v62_v18 }
  0x95   :  { %v102_v41 = vpop.permute.xlu0 %101  ;;  %v107_v42 = vpop.permute.xlu1 %106 }
  0x96   :  { %v110_v43 = vmul.f32 %v102_v41, %v92_v38  ;;  %v111_v44 = vmul.f32 %v107_v42, %v93_v39 }
  0x98   :  { %v113_v45 = vadd.f32 %v110_v43, %v63_v25  ;;  %v114_v46 = vadd.f32 %v111_v44, %v64_v26 }
  0x99   :  { %v126_v47 = vpop.permute.xlu0 %125  ;;  %v131_v48 = vpop.permute.xlu1 %130 }
  0x9a   :  { %v138_v49 = vsub.f32 %v19_v5, %v126_v47  ;;  %v139_v51 = vsub.f32 %v19_v5, %v131_v48 }
  0x9c   :  { %v141_v50 = vmax.f32 %v138_v49, 0.0  ;;  %v142_v57 = vmax.f32 %v139_v51, 0.0 }
  0x9d   :  { %v136_v52 = vpop.permute.xlu0 %135  ;;  %v147_v53 = vpop.permute.xlu1 %146 }
  0x9e   :  { %v140_v54 = vsub.f32 %v19_v5, %v136_v52  ;;  %v159_v55 = vmul.f32 %v147_v53, %v141_v50 }
  0xa0   :  { %v143_v58 = vmax.f32 %v140_v54, 0.0  ;;  %v162_v59 = vadd.f32 %v159_v55, %v112_v40 }
  0xa1   :  { %v152_v60 = vpop.permute.xlu0 %151  ;;  %v157_v61 = vpop.permute.xlu1 %156 }
  0xa2   :  { %v160_v63 = vmul.f32 %v152_v60, %v142_v57  ;;  %v161_v0 = vmul.f32 %v157_v61, %v143_v58  ;;  %v165_v52 = vmax.f32 %v162_v59, 0.0 }
  0xa4   :  { %v1005_v2 = vadd.f32 %v160_v63, %v113_v45  ;;  %v1007_v3 = vadd.f32 %v161_v0, %v114_v46 }
  0xa5   :  { %v183_v6 = vpop.permute.xlu0 %182  ;;  %v188_v7 = vpop.permute.xlu1 %187 }
  0xa6   :  { %v195_v8 = vsub.f32 %v171_v1, %v183_v6  ;;  %v196_v9 = vsub.f32 %v171_v1, %v188_v7  ;;  %v166_v63 = vmax.f32 %v1005_v2, 0.0  ;;  %v167_v0 = vmax.f32 %v1007_v3, 0.0 }
  0xa8   :  { %v198_v5 = vmax.f32 %v195_v8, 0.0  ;;  %v199_v14 = vmax.f32 %v196_v9, 0.0 }
  0xa9   :  { %v193_v10 = vpop.permute.xlu0 %192  ;;  %v204_v11 = vpop.permute.xlu1 %203 }
  0xaa   :  { %v197_v12 = vsub.f32 %v171_v1, %v193_v10  ;;  %v216_v13 = vmul.f32 %v204_v11, %v198_v5 }
  0xac   :  { %v200_v15 = vmax.f32 %v197_v12, 0.0 }
  0xad   :  { %v209_v16 = vpop.permute.xlu0 %208  ;;  %v214_v17 = vpop.permute.xlu1 %213 }
  0xae   :  { %v217_v18 = vmul.f32 %v209_v16, %v199_v14  ;;  %v218_v19 = vmul.f32 %v214_v17, %v200_v15 }
  0xb1   :  { %v230_v20 = vpop.permute.xlu0 %229  ;;  %v235_v21 = vpop.permute.xlu1 %234 }
  0xb2   :  { %v242_v22 = vsub.f32 %v171_v1, %v230_v20  ;;  %v243_v24 = vsub.f32 %v171_v1, %v235_v21 }
  0xb4   :  { %v245_v23 = vmax.f32 %v242_v22, 0.0  ;;  %v246_v29 = vmax.f32 %v243_v24, 0.0 }
  0xb5   :  { %v240_v25 = vpop.permute.xlu0 %239  ;;  %v251_v26 = vpop.permute.xlu1 %250 }
  0xb6   :  { %v244_v27 = vsub.f32 %v171_v1, %v240_v25  ;;  %v263_v28 = vmul.f32 %v251_v26, %v245_v23  ;;  %v327_v23 = vsub.s32 2, %v958_v62 }
  0xb8   :  { %v247_v30 = vmax.f32 %v244_v27, 0.0  ;;  %v266_v31 = vadd.f32 %v263_v28, %v216_v13  ;;  %v328_v26 = vrot.slane %v976_v4, %v327_v23 }
  0xb9   :  { %v256_v32 = vpop.permute.xlu0 %255  ;;  %v261_v33 = vpop.permute.xlu1 %260 }
  0xba   :  { %v264_v34 = vmul.f32 %v256_v32, %v246_v29  ;;  %v265_v35 = vmul.f32 %v261_v33, %v247_v30 }
  0xbc   :  { %v267_v36 = vadd.f32 %v264_v34, %v217_v18  ;;  %v268_v37 = vadd.f32 %v265_v35, %v218_v19  ;;  %v484_v34 = vsub.s32 3, %v958_v62 }
  0xbd   :  { %v280_v38 = vpop.permute.xlu0 %279  ;;  %v285_v39 = vpop.permute.xlu1 %284 }
  0xbe   :  { %v292_v40 = vsub.f32 %v171_v1, %v280_v38  ;;  %v293_v42 = vsub.f32 %v171_v1, %v285_v39 }
  0xc0   :  { %v295_v41 = vmax.f32 %v292_v40, 0.0  ;;  %v296_v47 = vmax.f32 %v293_v42, 0.0 }
  0xc1   :  { %v290_v43 = vpop.permute.xlu0 %289  ;;  %v301_v44 = vpop.permute.xlu1 %300 }
  0xc2   :  { %v294_v45 = vsub.f32 %v171_v1, %v290_v43  ;;  %v313_v46 = vmul.f32 %v301_v44, %v295_v41  ;;  %v485_v43 = vrot.slane %v976_v4, %v484_v34 }
  0xc4   :  { %v297_v48 = vmax.f32 %v294_v45, 0.0  ;;  %v316_v49 = vadd.f32 %v313_v46, %v266_v31 }
  0xc5   :  { %v306_v50 = vpop.permute.xlu0 %305  ;;  %v311_v51 = vpop.permute.xlu1 %310 }
  0xc6   :  { %v319_v53 = vmax.f32 %v316_v49, 0.0  ;;  %v314_v54 = vmul.f32 %v306_v50, %v296_v47  ;;  %v315_v55 = vmul.f32 %v311_v51, %v297_v48 }
  0xc8   :  { %v1009_v56 = vmin.f32 %v165_v52, %v319_v53  ;;  %v317_v57 = vadd.f32 %v314_v54, %v267_v36  ;;  %v318_v58 = vadd.f32 %v315_v55, %v268_v37 }
  0xc9   :  { %v340_v60 = vpop.permute.xlu0 %339  ;;  %v345_v61 = vpop.permute.xlu1 %344 }
  0xca   :  { %v320_v1 = vmax.f32 %v317_v57, 0.0  ;;  %v321_v6 = vmax.f32 %v318_v58, 0.0  ;;  %v352_v30 = vsub.f32 %v328_v26, %v340_v60  ;;  %v353_v35 = vsub.f32 %v328_v26, %v345_v61 }
  0xcc   :  { %v1013_v7 = vmin.f32 %v166_v63, %v320_v1  ;;  %v1015_v8 = vmin.f32 %v167_v0, %v321_v6  ;;  %v355_v39 = vmax.f32 %v352_v30, 0.0  ;;  %v356_v44 = vmax.f32 %v353_v35, 0.0 }
  0xcd   :  { %v350_v59 = vpop.permute.xlu0 %349  ;;  %v361_v5 = vpop.permute.xlu1 %360 }
  0xce   :  { %v354_v36 = vsub.f32 %v328_v26, %v350_v59  ;;  %v373_v51 = vmul.f32 %v361_v5, %v355_v39 }
  0xd0   :  { %v357_v47 = vmax.f32 %v354_v36, 0.0 }
  0xd1   :  { %v366_v9 = vpop.permute.xlu0 %365  ;;  %v371_v10 = vpop.permute.xlu1 %370 }
  0xd2   :  { %v374_v52 = vmul.f32 %v366_v9, %v356_v44  ;;  %v375_v4 = vmul.f32 %v371_v10, %v357_v47 }
  0xd5   :  { %v387_v11 = vpop.permute.xlu0 %386  ;;  %v392_v12 = vpop.permute.xlu1 %391 }
  0xd6   :  { %v399_v29 = vsub.f32 %v328_v26, %v387_v11  ;;  %v400_v38 = vsub.f32 %v328_v26, %v392_v12 }
  0xd8   :  { %v402_v37 = vmax.f32 %v399_v29, 0.0  ;;  %v403_v48 = vmax.f32 %v400_v38, 0.0 }
  0xd9   :  { %v397_v13 = vpop.permute.xlu0 %396  ;;  %v408_v14 = vpop.permute.xlu1 %407 }
  0xda   :  { %v401_v33 = vsub.f32 %v328_v26, %v397_v13  ;;  %v420_v49 = vmul.f32 %v408_v14, %v402_v37 }
  0xdc   :  { %v404_v42 = vmax.f32 %v401_v33, 0.0  ;;  %v423_v1 = vadd.f32 %v420_v49, %v373_v51 }
  0xdd   :  { %v413_v15 = vpop.permute.xlu0 %412  ;;  %v418_v16 = vpop.permute.xlu1 %417 }
  0xde   :  { %v421_v54 = vmul.f32 %v413_v15, %v403_v48  ;;  %v422_v55 = vmul.f32 %v418_v16, %v404_v42 }
  0xe0   :  { %v424_v15 = vadd.f32 %v421_v54, %v374_v52 }
  0xe1   :  { %v437_v17 = vpop.permute.xlu0 %436  ;;  %v442_v2 = vpop.permute.xlu1 %441 }
  0xe2   :  { %v449_v45 = vsub.f32 %v328_v26, %v437_v17  ;;  %v450_v46 = vsub.f32 %v328_v26, %v442_v2 }
  0xe4   :  { %v452_v60 = vmax.f32 %v449_v45, 0.0  ;;  %v453_v61 = vmax.f32 %v450_v46, 0.0 }
  0xe5   :  { %v497_v18 = vpop.permute.xlu0 %496  ;;  %v1017_v3 = vpop.permute.xlu1 %501 }
  0xe6   :  { %v509_v57 = vsub.f32 %v485_v43, %v497_v18  ;;  %v510_v11 = vsub.f32 %v485_v43, %v1017_v3  ;;  %v425_v18 = vadd.f32 %v422_v55, %v375_v4 }
  0xe8   :  { %v512_v16 = vmax.f32 %v509_v57, 0.0  ;;  %v513_v3 = vmax.f32 %v510_v11, 0.0 }
  0xe9   :  { %v544_v19 = vpop.permute.xlu0 %543  ;;  %v549_v20 = vpop.permute.xlu1 %548 }
  0xea   :  { %v556_v50 = vsub.f32 %v485_v43, %v544_v19  ;;  %v557_v63 = vsub.f32 %v485_v43, %v549_v20 }
  0xec   :  { %v559_v6 = vmax.f32 %v556_v50, 0.0  ;;  %v560_v19 = vmax.f32 %v557_v63, 0.0 }
  0xed   :  { %v447_v21 = vpop.permute.xlu0 %446  ;;  %v1019_v22 = vpop.permute.xlu1 %506 }
  0xee   :  { %v451_v58 = vsub.f32 %v328_v26, %v447_v21  ;;  %v511_v12 = vsub.f32 %v485_v43, %v1019_v22 }
  0xf0   :  { %v454_v17 = vmax.f32 %v451_v58, 0.0  ;;  %v514_v26 = vmax.f32 %v511_v12, 0.0 }
  0xf1   :  { %v554_v24 = vpop.permute.xlu0 %553  ;;  %v594_v25 = vpop.permute.xlu1 %593 }
  0xf2   :  { %v558_v0 = vsub.f32 %v485_v43, %v554_v24  ;;  %v606_v59 = vsub.f32 %v485_v43, %v594_v25 }
  0xf4   :  { %v561_v20 = vmax.f32 %v558_v0, 0.0  ;;  %v609_v21 = vmax.f32 %v606_v59, 0.0 }
  0xf5   :  { %v1023_v27 = vpop.permute.xlu0 %598  ;;  %v458_v28 = vpop.permute.xlu1 %457 }
  0xf6   :  { %v470_v5 = vmul.f32 %v458_v28, %v452_v60  ;;  %v607_v10 = vsub.f32 %v485_v43, %v1023_v27 }
  0xf8   :  { %v473_v22 = vadd.f32 %v470_v5, %v423_v1  ;;  %v610_v36 = vmax.f32 %v607_v10, 0.0 }
  0xf9   :  { %v463_v31 = vpop.permute.xlu0 %462  ;;  %v518_v32 = vpop.permute.xlu1 %517 }
  0xfa   :  { %v471_v9 = vmul.f32 %v463_v31, %v453_v61  ;;  %v530_v23 = vmul.f32 %v518_v32, %v512_v16  ;;  %v476_v42 = vmax.f32 %v473_v22, 0.0 }
  0xfc   :  { %v474_v28 = vadd.f32 %v471_v9, %v424_v15 }
  0xfd   :  { %v523_v40 = vpop.permute.xlu0 %522  ;;  %v565_v41 = vpop.permute.xlu1 %564 }
  0xfe   :  { %v577_v2 = vmul.f32 %v565_v41, %v559_v6  ;;  %v531_v37 = vmul.f32 %v523_v40, %v513_v3  ;;  %v477_v32 = vmax.f32 %v474_v28, 0.0 }
 0x100   :  { %v580_v31 = vadd.f32 %v577_v2, %v530_v23  ;;  %v480_v40 = vmin.f32 %v1013_v7, %v477_v32 }
 0x101   :  { %v570_v62 = vpop.permute.xlu0 %569  ;;  %v604_v53 = vpop.permute.xlu1 %603 }
 0x102   :  { %v608_v24 = vsub.f32 %v485_v43, %v604_v53  ;;  %v578_v33 = vmul.f32 %v570_v62, %v560_v19  ;;  %v479_v62 = vmin.f32 %v1009_v56, %v476_v42 }
 0x104   :  { %v611_v38 = vmax.f32 %v608_v24, 0.0  ;;  %v581_v45 = vadd.f32 %v578_v33, %v531_v37 }
 0x105   :  { %v468_v13 = vpop.permute.xlu0 %467  ;;  %v528_v14 = vpop.permute.xlu1 %527 }
 0x106   :  { %v472_v25 = vmul.f32 %v468_v13, %v454_v17  ;;  %v532_v41 = vmul.f32 %v528_v14, %v514_v26 }
 0x108   :  { %v475_v39 = vadd.f32 %v472_v25, %v425_v18 }
 0x109   :  { %v575_v29 = vpop.permute.xlu0 %574  ;;  %v615_v30 = vpop.permute.xlu1 %614 }
 0x10a   :  { %v579_v34 = vmul.f32 %v575_v29, %v561_v20  ;;  %v627_v35 = vmul.f32 %v615_v30, %v609_v21  ;;  %v478_v49 = vmax.f32 %v475_v39, 0.0 }
 0x10c   :  { %v630_v27 = vadd.f32 %v627_v35, %v580_v31  ;;  %v582_v46 = vadd.f32 %v579_v34, %v532_v41  ;;  %v481_v55 = vmin.f32 %v1015_v8, %v478_v49 }
 0x10d   :  { %v620_v43 = vpop.permute.xlu0 %619  ;;  %v625_v44 = vpop.permute.xlu1 %624 }
 0x10e   :  { %v628_v47 = vmul.f32 %v620_v43, %v610_v36  ;;  %v629_v48 = vmul.f32 %v625_v44, %v611_v38  ;;  %v633_v50 = vmax.f32 %v630_v27, 0.0 }
 0x110   :  { %v631_v51 = vadd.f32 %v628_v47, %v581_v45  ;;  %v632_v52 = vadd.f32 %v629_v48, %v582_v46  ;;  %v636_v57 = vmin.f32 %v479_v62, %v633_v50 }
 0x112   :  { %v634_v53 = vmax.f32 %v631_v51, 0.0  ;;  %v635_v54 = vmax.f32 %v632_v52, 0.0 }
 0x114   :  { %v637_v58 = vmin.f32 %v480_v40, %v634_v53  ;;  %v638_v61 = vmin.f32 %v481_v55, %v635_v54 }
 0x116   :  { %v639_v60 = vmin.f32 %v636_v57, %v637_v58 }
 0x118   :  { %v640_v63 = vmin.f32 %v639_v60, %v638_v61 }
 0x11a   :  { %v641_v0 = vrot.slane %v640_v63, 4 }
 0x11c   :  { %v642_v4 = vmin.f32 %v640_v63, %v641_v0 }
 0x11e   :  { %v643_v1 = vrot.slane %v642_v4, 2 }
 0x120   :  { %v644_v6 = vmin.f32 %v642_v4, %v643_v1 }
 0x122   :  { %v645_v59 = vrot.slane %v644_v6, 1 }
 0x124   :  { %v646_v11 = vmin.f32 %v644_v6, %v645_v59 }
 0x126   :  { %647 = vst [vmem:[#allocation2] sm:$0x1] %v646_v11 }
 0x127   :  { %743 = shalt.err (!%p740_p4)
}
 0x128   :  { %s744_s26 = scalar_lea.hbm %s1048_s3, 16 }
 0x129   :  { %p745_p5 = scmp.ne.s32.totalorder %s1048_s3, %s744_s26  ;;  %p748_p6 = scmp.lt.u32.totalorder %s744_s26, %s1048_s3 }
 0x12b   :  { %p750_p7 = pnand %p748_p6, %p745_p5 }
 0x12d   :  { %753 = shalt.err (!%p750_p7)
}
 0x12e   :  { %657 = dma.vmem_to_hbm [thread:$0]  %s655_s21, 16, %s1048_s3, [#allocation3]  }
 0x12f   :  { %754 = dma.done.wait [#allocation3], 16  }
 0x130   :  { %755 = vsyncadd [#allocation3], 4294967280 }
 0x131   :  { %661 = vsyncpa [#allocation3], 1 }

</bundles_post_ra>
